<compile_context>
chip_gen: v6e
topology: v6e:2x2x1
jax: 0.10.0
libtpu: 0.0.40
codegen_flags: <defaults>
</compile_context>

<pallas_src>
import jax
import jax.numpy as jnp
from jax.experimental import pallas as pl
from jax.experimental.pallas import tpu as pltpu


# --------------------------------------------------------------------------- #
# Kernel
# --------------------------------------------------------------------------- #
def _siamese_kernel(x1_ref, x2_ref, w1_ref, b1_ref, w2_ref, b2_ref,
                    e1_ref, e2_ref, acc1_ref, acc2_ref):
    """One (TM, TK) step of the shared-weight 2-layer MLP encoder for BOTH
    branches.

    Grid = (m_tiles, k_tiles); k is the reduction over the flattened feature
    dim.  x tiles arrive f32 and are cast to bf16 on the VPU; accumulation is
    f32 in VMEM scratch; the bias + ReLU + second-matmul epilogue runs only on
    the last K step.
    """
    k = pl.program_id(1)

    @pl.when(k == 0)
    def _init():
        acc1_ref[...] = jnp.zeros_like(acc1_ref)
        acc2_ref[...] = jnp.zeros_like(acc2_ref)

    w1 = w1_ref[...]                                        # (TK, HIDDEN) bf16
    acc1_ref[...] += jnp.dot(x1_ref[...].astype(jnp.bfloat16), w1,
                             preferred_element_type=jnp.float32)
    acc2_ref[...] += jnp.dot(x2_ref[...].astype(jnp.bfloat16), w1,
                             preferred_element_type=jnp.float32)

    @pl.when(k == pl.num_programs(1) - 1)
    def _finalize():
        b1 = b1_ref[...]                                    # (1, HIDDEN) f32
        w2 = w2_ref[...]                                    # (HIDDEN, EMBED) bf16
        b2 = b2_ref[...]                                    # (1, EMBED) f32
        h1 = jnp.maximum(acc1_ref[...] + b1, 0.0).astype(jnp.bfloat16)
        h2 = jnp.maximum(acc2_ref[...] + b1, 0.0).astype(jnp.bfloat16)
        e1_ref[...] = (jnp.dot(h1, w2, preferred_element_type=jnp.float32)
                       + b2).astype(e1_ref.dtype)
        e2_ref[...] = (jnp.dot(h2, w2, preferred_element_type=jnp.float32)
                       + b2).astype(e2_ref.dtype)


# --------------------------------------------------------------------------- #
# Tiling policy
# --------------------------------------------------------------------------- #
def _round_up(x, m):
    return ((x + m - 1) // m) * m


def _choose_m_tiling(n):
    """(m_pad, tm): rows padded to a multiple of 16, tile a multiple of 16,
    >= 2 tiles once the batch allows it (v7x megacore), 512-row tiles for
    large batches."""
    m = _round_up(max(n, 1), 16)
    if m <= 16:
        return m, m                       # single tiny tile
    if m <= 64:
        return m, 16                      # 2-4 tiles of 16, no padding
    if m <= 1024:
        tm = _round_up(m // 2, 16)        # exactly 2 big tiles
        return _round_up(m, tm), tm
    return _round_up(m, 512), 512         # stream 512-row tiles


def _choose_k_tiling(d, max_tk=2048):
    """K (flattened-feature) tile.  Small D: one step (W1 VMEM-resident).
    Large D: stream W1 in (TK, HIDDEN) slices so it never has to sit whole in
    VMEM (v7x physical VMEM is 64 MiB)."""
    if d <= max_tk:
        return d, 1
    for tk in range(max_tk, 127, -128):
        if d % tk == 0:
            return tk, d // tk
    # TODO(synk): D not a multiple of 128 needs K zero-padding of x and W1.
    return d, 1


def _spec(shape, index_map, buffers=None):
    """BlockSpec, optionally with an explicit pipeline buffer count.

    pipeline_mode=pl.Buffered(n) is a newer Pallas knob (single-buffer the
    constant-index resident weights/biases; deeper-buffer small x tiles);
    fall back to the default double-buffered pipeline on older JAX.
    """
    if buffers is not None:
        try:
            return pl.BlockSpec(shape, index_map,
                                pipeline_mode=pl.Buffered(buffers))
        except (TypeError, AttributeError):
            pass
    return pl.BlockSpec(shape, index_map)


# --------------------------------------------------------------------------- #
# Wrapper (== SiameseNetwork.forward)
# --------------------------------------------------------------------------- #
def siamese_forward(x1, x2, w1, b1, w2, b2, *, out_dtype=jnp.float32):
    """x1, x2: (N, C, H, W) float32.  Returns (embedding1, embedding2),
    each (N, EMBED) of `out_dtype` (pass bf16 to halve writeback bytes if the
    consumer tolerates it)."""
    n = x1.shape[0]
    d = int(x1.size) // n
    hidden = w1.shape[1]
    embed = w2.shape[1]

    m_pad, tm = _choose_m_tiling(n)
    num_m = m_pad // tm
    tk, num_k = _choose_k_tiling(d)

    # (N, C, H, W) -> (N, D) row-major flatten (== torch .view(N, -1)).  No
    # concat / dtype pass: the kernel reads the f32 rows straight from HBM and
    # casts to bf16 on-chip.  Row padding is a no-op for tile-aligned batches.
    x1f = x1.reshape(n, d)
    x2f = x2.reshape(n, d)
    if m_pad != n:
        x1f = jnp.pad(x1f, ((0, m_pad - n), (0, 0)))
        x2f = jnp.pad(x2f, ((0, m_pad - n), (0, 0)))

    # bf16 weights: halves W1 HBM traffic; accumulation stays f32 in-kernel.
    w1_bf = w1.astype(jnp.bfloat16)
    w2_bf = w2.astype(jnp.bfloat16)
    b1_2d = b1.reshape(1, hidden).astype(jnp.float32)
    b2_2d = b2.reshape(1, embed).astype(jnp.float32)

    # Deeper x buffering only when tiles are small relative to DMA latency.
    x_buffers = 3 if (tm <= 128 and num_m >= 3) else None
    # W1 is resident (single-buffer) only when there is a single K step;
    # otherwise it streams along K and keeps the default double buffer.
    w1_buffers = 1 if num_k == 1 else None

    out_bytes = jnp.dtype(out_dtype).itemsize
    flops = 4 * m_pad * d * hidden + 4 * m_pad * hidden * embed
    bytes_accessed = (2 * m_pad * d * 4                                 # x1+x2 (f32)
                      + d * hidden * 2 * (num_m if num_k > 1 else 1)    # W1 stream
                      + hidden * embed * 2                              # W2
                      + (hidden + embed) * 4                            # biases
                      + 2 * m_pad * embed * out_bytes)                  # e1+e2

    grid_spec = pltpu.PrefetchScalarGridSpec(
        num_scalar_prefetch=0,
        grid=(num_m, num_k),
        in_specs=[
            _spec((tm, tk), lambda i, k: (i, k), x_buffers),        # x1 tile
            _spec((tm, tk), lambda i, k: (i, k), x_buffers),        # x2 tile
            _spec((tk, hidden), lambda i, k: (k, 0), w1_buffers),   # W1 K-slice
            _spec((1, hidden), lambda i, k: (0, 0), 1),             # b1 (resident)
            _spec((hidden, embed), lambda i, k: (0, 0), 1),         # W2 (resident)
            _spec((1, embed), lambda i, k: (0, 0), 1),              # b2 (resident)
        ],
        out_specs=[
            pl.BlockSpec((tm, embed), lambda i, k: (i, 0)),
            pl.BlockSpec((tm, embed), lambda i, k: (i, 0)),
        ],
        scratch_shapes=[pltpu.VMEM((tm, hidden), jnp.float32),
                        pltpu.VMEM((tm, hidden), jnp.float32)],
    )

    e1_pad, e2_pad = pl.pallas_call(
        _siamese_kernel,
        out_shape=(jax.ShapeDtypeStruct((m_pad, embed), out_dtype),
                   jax.ShapeDtypeStruct((m_pad, embed), out_dtype)),
        grid_spec=grid_spec,
        compiler_params=pltpu.CompilerParams(
            dimension_semantics=("parallel", "arbitrary")),
        cost_estimate=pl.CostEstimate(
            flops=flops, transcendentals=0, bytes_accessed=bytes_accessed),
    )(x1f, x2f, w1_bf, b1_2d, w2_bf, b2_2d)

    return e1_pad[:n], e2_pad[:n]


# --------------------------------------------------------------------------- #
# Demo / self-test
# --------------------------------------------------------------------------- #
if __name__ == "__main__":
    # Small shapes consistent with an image-pair Siamese forward.
    N, C, H, W = 2, 4, 16, 16
    D = C * H * W            # 1024
    HIDDEN = 128
    EMBED = 128

    key = jax.random.PRNGKey(0)
    k_x1, k_x2, k_w1, k_b1, k_w2, k_b2 = jax.random.split(key, 6)

    x1 = jax.random.normal(k_x1, (N, C, H, W), dtype=jnp.float32)
    x2 = jax.random.normal(k_x2, (N, C, H, W), dtype=jnp.float32)

    # Deterministic encoder parameters (shared across both branches).
    w1 = jax.random.normal(k_w1, (D, HIDDEN), dtype=jnp.float32) * (1.0 / jnp.sqrt(D))
    b1 = jax.random.normal(k_b1, (HIDDEN,), dtype=jnp.float32) * 0.01
    w2 = jax.random.normal(k_w2, (HIDDEN, EMBED), dtype=jnp.float32) * (1.0 / jnp.sqrt(HIDDEN))
    b2 = jax.random.normal(k_b2, (EMBED,), dtype=jnp.float32) * 0.01

    e1, e2 = siamese_forward(x1, x2, w1, b1, w2, b2)
    jax.block_until_ready((e1, e2))

    # Pure-JAX reference with the same bf16-operand / f32-accumulate contract.
    def ref_encode(x):
        xf = x.reshape(N, D).astype(jnp.bfloat16)
        h = jnp.dot(xf, w1.astype(jnp.bfloat16),
                    preferred_element_type=jnp.float32) + b1
        h = jnp.maximum(h, 0.0).astype(jnp.bfloat16)
        return jnp.dot(h, w2.astype(jnp.bfloat16),
                       preferred_element_type=jnp.float32) + b2

    r1, r2 = ref_encode(x1), ref_encode(x2)
    assert e1.shape == (N, EMBED) and e2.shape == (N, EMBED)
    assert jnp.allclose(e1, r1, atol=2e-2, rtol=2e-2)
    assert jnp.allclose(e2, r2, atol=2e-2, rtol=2e-2)

    # Sanity vs. full-f32 math (looser: bf16 operand quantization).
    f1 = jnp.maximum(x1.reshape(N, D) @ w1 + b1, 0.0) @ w2 + b2
    f2 = jnp.maximum(x2.reshape(N, D) @ w1 + b1, 0.0) @ w2 + b2
    assert jnp.allclose(e1, f1, atol=5e-2, rtol=5e-2)
    assert jnp.allclose(e2, f2, atol=5e-2, rtol=5e-2)

    print("KERNEL_OK")
</pallas_src>

<mosaic_0001>
module attributes {stable_mosaic.version = 11 : i64} {
  func.func @_siamese_kernel(%arg0: i32, %arg1: i32, %arg2: memref<16x1024xf32, #tpu.memory_space<vmem>>, %arg3: memref<16x1024xf32, #tpu.memory_space<vmem>>, %arg4: memref<1024x128xbf16, #tpu.memory_space<vmem>>, %arg5: memref<1x128xf32, #tpu.memory_space<vmem>>, %arg6: memref<128x128xbf16, #tpu.memory_space<vmem>>, %arg7: memref<1x128xf32, #tpu.memory_space<vmem>>, %arg8: memref<16x128xf32, #tpu.memory_space<vmem>>, %arg9: memref<16x128xf32, #tpu.memory_space<vmem>>, %arg10: memref<16x128xf32, #tpu.memory_space<vmem>>, %arg11: memref<16x128xf32, #tpu.memory_space<vmem>>) attributes {dimension_semantics = [#tpu.dimension_semantics<parallel>, #tpu.dimension_semantics<arbitrary>], iteration_bounds = array<i64: 1, 1>, scalar_prefetch = 0 : i64, scratch_operands = 2 : i64, tpu.core_type = #tpu.core_type<tc>, window_params = [{transform_indices = @transform_0, window_bounds = array<i64: 16, 1024>}, {transform_indices = @transform_1, window_bounds = array<i64: 16, 1024>}, {pipeline_mode = #tpu.pipeline_mode<synchronous>, transform_indices = @transform_2, window_bounds = array<i64: 1024, 128>}, {pipeline_mode = #tpu.pipeline_mode<synchronous>, transform_indices = @transform_3, window_bounds = array<i64: 1, 128>}, {pipeline_mode = #tpu.pipeline_mode<synchronous>, transform_indices = @transform_4, window_bounds = array<i64: 128, 128>}, {pipeline_mode = #tpu.pipeline_mode<synchronous>, transform_indices = @transform_5, window_bounds = array<i64: 1, 128>}, {transform_indices = @transform_6, window_bounds = array<i64: 16, 128>}, {transform_indices = @transform_7, window_bounds = array<i64: 16, 128>}]} {
    %c0_i32 = arith.constant 0 : i32
    %0 = arith.cmpi eq, %arg1, %c0_i32 : i32
    %1 = arith.extui %0 : i1 to i32
    %c0_i32_0 = arith.constant 0 : i32
    %2 = arith.cmpi ne, %1, %c0_i32_0 : i32
    scf.if %2 {
      %cst_17 = arith.constant 0.000000e+00 : f32
      %19 = vector.broadcast %cst_17 : f32 to vector<16x128xf32>
      %c0_18 = arith.constant 0 : index
      %c0_19 = arith.constant 0 : index
      %20 = vector.load %arg10[%c0_18, %c0_19] : memref<16x128xf32, #tpu.memory_space<vmem>>, vector<16x128xf32>
      tpu.vector_store %arg10[%c0_18, %c0_19], %19 {strides = array<i32>} : memref<16x128xf32, #tpu.memory_space<vmem>>, vector<16x128xf32>,
      %cst_20 = arith.constant 0.000000e+00 : f32
      %21 = vector.broadcast %cst_20 : f32 to vector<16x128xf32>
      %c0_21 = arith.constant 0 : index
      %c0_22 = arith.constant 0 : index
      %22 = vector.load %arg11[%c0_21, %c0_22] : memref<16x128xf32, #tpu.memory_space<vmem>>, vector<16x128xf32>
      tpu.vector_store %arg11[%c0_21, %c0_22], %21 {strides = array<i32>} : memref<16x128xf32, #tpu.memory_space<vmem>>, vector<16x128xf32>,
    } else {
    }
    %c0 = arith.constant 0 : index
    %c0_1 = arith.constant 0 : index
    %3 = vector.load %arg4[%c0, %c0_1] : memref<1024x128xbf16, #tpu.memory_space<vmem>>, vector<1024x128xbf16>
    %c0_2 = arith.constant 0 : index
    %c0_3 = arith.constant 0 : index
    %4 = vector.load %arg10[%c0_2, %c0_3] : memref<16x128xf32, #tpu.memory_space<vmem>>, vector<16x128xf32>
    %c0_4 = arith.constant 0 : index
    %c0_5 = arith.constant 0 : index
    %5 = vector.load %arg2[%c0_4, %c0_5] : memref<16x1024xf32, #tpu.memory_space<vmem>>, vector<16x1024xf32>
    %6 = arith.truncf %5 : vector<16x1024xf32> to vector<16x1024xbf16>
    %cst = arith.constant dense<0.000000e+00> : vector<16x128xf32>
    %7 = tpu.matmul %6, %3, %cst {dimension_numbers = #tpu.dot_dimension_numbers<[1], [0], [0], [1], [0, 0, 1, 1], [], []>} : vector<16x1024xbf16>, vector<1024x128xbf16>, vector<16x128xf32> -> vector<16x128xf32>
    %8 = arith.addf %4, %7 : vector<16x128xf32>
    %c0_6 = arith.constant 0 : index
    %c0_7 = arith.constant 0 : index
    %9 = vector.load %arg10[%c0_6, %c0_7] : memref<16x128xf32, #tpu.memory_space<vmem>>, vector<16x128xf32>
    tpu.vector_store %arg10[%c0_6, %c0_7], %8 {strides = array<i32>} : memref<16x128xf32, #tpu.memory_space<vmem>>, vector<16x128xf32>,
    %c0_8 = arith.constant 0 : index
    %c0_9 = arith.constant 0 : index
    %10 = vector.load %arg11[%c0_8, %c0_9] : memref<16x128xf32, #tpu.memory_space<vmem>>, vector<16x128xf32>
    %c0_10 = arith.constant 0 : index
    %c0_11 = arith.constant 0 : index
    %11 = vector.load %arg3[%c0_10, %c0_11] : memref<16x1024xf32, #tpu.memory_space<vmem>>, vector<16x1024xf32>
    %12 = arith.truncf %11 : vector<16x1024xf32> to vector<16x1024xbf16>
    %cst_12 = arith.constant dense<0.000000e+00> : vector<16x128xf32>
    %13 = tpu.matmul %12, %3, %cst_12 {dimension_numbers = #tpu.dot_dimension_numbers<[1], [0], [0], [1], [0, 0, 1, 1], [], []>} : vector<16x1024xbf16>, vector<1024x128xbf16>, vector<16x128xf32> -> vector<16x128xf32>
    %14 = arith.addf %10, %13 : vector<16x128xf32>
    %c0_13 = arith.constant 0 : index
    %c0_14 = arith.constant 0 : index
    %15 = vector.load %arg11[%c0_13, %c0_14] : memref<16x128xf32, #tpu.memory_space<vmem>>, vector<16x128xf32>
    tpu.vector_store %arg11[%c0_13, %c0_14], %14 {strides = array<i32>} : memref<16x128xf32, #tpu.memory_space<vmem>>, vector<16x128xf32>,
    %c0_i32_15 = arith.constant 0 : i32
    %16 = arith.cmpi eq, %arg1, %c0_i32_15 : i32
    %17 = arith.extui %16 : i1 to i32
    %c0_i32_16 = arith.constant 0 : i32
    %18 = arith.cmpi ne, %17, %c0_i32_16 : i32
    scf.if %18 {
      %c0_17 = arith.constant 0 : index
      %c0_18 = arith.constant 0 : index
      %19 = vector.load %arg5[%c0_17, %c0_18] : memref<1x128xf32, #tpu.memory_space<vmem>>, vector<1x128xf32>
      %c0_19 = arith.constant 0 : index
      %c0_20 = arith.constant 0 : index
      %20 = vector.load %arg6[%c0_19, %c0_20] : memref<128x128xbf16, #tpu.memory_space<vmem>>, vector<128x128xbf16>
      %c0_21 = arith.constant 0 : index
      %c0_22 = arith.constant 0 : index
      %21 = vector.load %arg7[%c0_21, %c0_22] : memref<1x128xf32, #tpu.memory_space<vmem>>, vector<1x128xf32>
      %c0_23 = arith.constant 0 : index
      %c0_24 = arith.constant 0 : index
      %22 = vector.load %arg10[%c0_23, %c0_24] : memref<16x128xf32, #tpu.memory_space<vmem>>, vector<16x128xf32>
      %23 = vector.broadcast %19 : vector<1x128xf32> to vector<16x128xf32>
      %24 = arith.addf %22, %23 : vector<16x128xf32>
      %cst_25 = arith.constant 0.000000e+00 : f32
      %25 = vector.broadcast %cst_25 : f32 to vector<16x128xf32>
      %26 = arith.maximumf %24, %25 : vector<16x128xf32>
      %27 = arith.truncf %26 : vector<16x128xf32> to vector<16x128xbf16>
      %c0_26 = arith.constant 0 : index
      %c0_27 = arith.constant 0 : index
      %28 = vector.load %arg11[%c0_26, %c0_27] : memref<16x128xf32, #tpu.memory_space<vmem>>, vector<16x128xf32>
      %29 = vector.broadcast %19 : vector<1x128xf32> to vector<16x128xf32>
      %30 = arith.addf %28, %29 : vector<16x128xf32>
      %cst_28 = arith.constant 0.000000e+00 : f32
      %31 = vector.broadcast %cst_28 : f32 to vector<16x128xf32>
      %32 = arith.maximumf %30, %31 : vector<16x128xf32>
      %33 = arith.truncf %32 : vector<16x128xf32> to vector<16x128xbf16>
      %cst_29 = arith.constant dense<0.000000e+00> : vector<16x128xf32>
      %34 = tpu.matmul %27, %20, %cst_29 {dimension_numbers = #tpu.dot_dimension_numbers<[1], [0], [0], [1], [0, 0, 1, 1], [], []>} : vector<16x128xbf16>, vector<128x128xbf16>, vector<16x128xf32> -> vector<16x128xf32>
      %35 = vector.broadcast %21 : vector<1x128xf32> to vector<16x128xf32>
      %36 = arith.addf %34, %35 : vector<16x128xf32>
      %c0_30 = arith.constant 0 : index
      %c0_31 = arith.constant 0 : index
      %37 = vector.load %arg8[%c0_30, %c0_31] : memref<16x128xf32, #tpu.memory_space<vmem>>, vector<16x128xf32>
      tpu.vector_store %arg8[%c0_30, %c0_31], %36 {strides = array<i32>} : memref<16x128xf32, #tpu.memory_space<vmem>>, vector<16x128xf32>,
      %cst_32 = arith.constant dense<0.000000e+00> : vector<16x128xf32>
      %38 = tpu.matmul %33, %20, %cst_32 {dimension_numbers = #tpu.dot_dimension_numbers<[1], [0], [0], [1], [0, 0, 1, 1], [], []>} : vector<16x128xbf16>, vector<128x128xbf16>, vector<16x128xf32> -> vector<16x128xf32>
      %39 = vector.broadcast %21 : vector<1x128xf32> to vector<16x128xf32>
      %40 = arith.addf %38, %39 : vector<16x128xf32>
      %c0_33 = arith.constant 0 : index
      %c0_34 = arith.constant 0 : index
      %41 = vector.load %arg9[%c0_33, %c0_34] : memref<16x128xf32, #tpu.memory_space<vmem>>, vector<16x128xf32>
      tpu.vector_store %arg9[%c0_33, %c0_34], %40 {strides = array<i32>} : memref<16x128xf32, #tpu.memory_space<vmem>>, vector<16x128xf32>,
    } else {
    }
    return
  }
  func.func @transform_0(%arg0: i32, %arg1: i32) -> (i32, i32) {
    %c0_i32 = arith.constant 0 : i32
    return %arg0, %arg1 : i32, i32
  }
  func.func @transform_1(%arg0: i32, %arg1: i32) -> (i32, i32) {
    %c0_i32 = arith.constant 0 : i32
    return %arg0, %arg1 : i32, i32
  }
  func.func @transform_2(%arg0: i32, %arg1: i32) -> (i32, i32) {
    %c0_i32 = arith.constant 0 : i32
    %c0_i32_0 = arith.constant 0 : i32
    return %arg1, %c0_i32 : i32, i32
  }
  func.func @transform_3(%arg0: i32, %arg1: i32) -> (i32, i32) {
    %c0_i32 = arith.constant 0 : i32
    %c0_i32_0 = arith.constant 0 : i32
    %c0_i32_1 = arith.constant 0 : i32
    return %c0_i32, %c0_i32_0 : i32, i32
  }
  func.func @transform_4(%arg0: i32, %arg1: i32) -> (i32, i32) {
    %c0_i32 = arith.constant 0 : i32
    %c0_i32_0 = arith.constant 0 : i32
    %c0_i32_1 = arith.constant 0 : i32
    return %c0_i32, %c0_i32_0 : i32, i32
  }
  func.func @transform_5(%arg0: i32, %arg1: i32) -> (i32, i32) {
    %c0_i32 = arith.constant 0 : i32
    %c0_i32_0 = arith.constant 0 : i32
    %c0_i32_1 = arith.constant 0 : i32
    return %c0_i32, %c0_i32_0 : i32, i32
  }
  func.func @transform_6(%arg0: i32, %arg1: i32) -> (i32, i32) {
    %c0_i32 = arith.constant 0 : i32
    %c0_i32_0 = arith.constant 0 : i32
    return %arg0, %c0_i32 : i32, i32
  }
  func.func @transform_7(%arg0: i32, %arg1: i32) -> (i32, i32) {
    %c0_i32 = arith.constant 0 : i32
    %c0_i32_0 = arith.constant 0 : i32
    return %arg0, %c0_i32 : i32, i32
  }
}

</mosaic_0001>

<bundles_post_ra>
// kernel: tpu_custom_call.1
= control target key start
LH: loop header
LB: loop body
LE: loop exit
PB: predicated region body
PF: predicated region fallthrough
CT: control target
= control target key end

     0   :  { %13 = vsyncpa [#allocation5], 0  ;;  %s2069_s0 = inlined_call_operand.hbm [shape: f32[16,1024], index: 0, kind: input, shape index: {}]   ;;  %s2070_s1 = inlined_call_operand.hbm [shape: f32[16,1024], index: 1, kind: input, shape index: {}]   ;;  %s2071_s2 = inlined_call_operand.hbm [shape: bf16[1024,128], index: 2, kind: input, shape index: {}]   ;;  %s2072_s3 = inlined_call_operand.vmem [shape: f32[1,128], index: 3, kind: input, shape index: {}]   ;;  %s2073_s4 = inlined_call_operand.hbm [shape: bf16[128,128], index: 4, kind: input, shape index: {}]   ;;  %s2074_s5 = inlined_call_operand.vmem [shape: f32[1,128], index: 5, kind: input, shape index: {}]   ;;  %s2075_s6 = inlined_call_operand.hbm [shape: f32[16,128], index: 6, kind: output, shape index: {0}]   ;;  %s2076_s7 = inlined_call_operand.hbm [shape: f32[16,128], index: 7, kind: output, shape index: {1}]  }
   0x1   :  { %14 = vsyncpa [#allocation8], 0 }
   0x2   :  { %15 = vsyncpa [#allocation11], 0 }
   0x3   :  { %16 = vsyncpa [#allocation6], 0 }
   0x4   :  { %17 = vsyncpa [#allocation14], 0  ;;  %s1730_s24 = smov [#allocation7]   ;;  %s1731_s26 = smov [#allocation4]  }
   0x5   :  { %s35_s25 = sshll.u32 %s1730_s24, 4  ;;  %s23_s27 = sshll.u32 %s1731_s26, 4  ;;  %s36_s25 = int_to_ptr.vmem [resolvable:$true] %s35_s25  ;;  %s24_s27 = int_to_ptr.vmem [resolvable:$true] %s23_s27 }
   0x6   :  { %s1608_s28 = scalar_lea.vmem %s36_s25, 2048  ;;  %p1613_p1 = scmp.lt.s32.totalorder %s36_s25, %s36_s25 }
   0x7   :  { %p1609_p0 = scmp.ne.s32.totalorder %s36_s25, %s1608_s28  ;;  %p1614_p2 = scmp.lt.s32.totalorder %s1608_s28, %s1608_s28 }
   0x9   :  { %p1615_p3 = por %p1614_p2, %p1613_p1 }
   0xb   :  { %p1616_p4 = pnand %p1615_p3, %p1609_p0 }
   0xd   :  { %1619 = shalt.err (!%p1616_p4)
}
   0xe   :  { %s1732_s29 = smov 1024   ;;  %s1733_s30 = smov 64  }
   0xf   :  { %41 = dma.hbm_to_vmem [thread:$0]  %s2070_s1, 2048, %s36_s25, [#allocation8], %s1732_s29, %s1732_s29, %s1733_s30  }
  0x10   :  { %s1628_s10 = scalar_lea.vmem %s24_s27, 2048  ;;  %p1633_p6 = scmp.lt.s32.totalorder %s24_s27, %s24_s27 }
  0x11   :  { %p1629_p5 = scmp.ne.s32.totalorder %s24_s27, %s1628_s10  ;;  %p1634_p7 = scmp.lt.s32.totalorder %s1628_s10, %s1628_s10 }
  0x13   :  { %p1635_p8 = por %p1634_p7, %p1633_p6 }
  0x15   :  { %p1636_p9 = pnand %p1635_p8, %p1629_p5 }
  0x17   :  { %1639 = shalt.err (!%p1636_p9)
}
  0x18   :  { %29 = dma.hbm_to_vmem [thread:$0]  %s2069_s0, 2048, %s24_s27, [#allocation5], %s1732_s29, %s1732_s29, %s1733_s30  }
  0x19   :  { %s1734_s13 = smov [#allocation9]   ;;  %s1735_s15 = smov [#allocation10]  }
  0x1a   :  { %s47_s14 = sshll.u32 %s1734_s13, 4  ;;  %s61_s16 = sshll.u32 %s1735_s15, 4  ;;  %s48_s14 = int_to_ptr.vmem [resolvable:$true] %s47_s14  ;;  %s62_s16 = int_to_ptr.vmem [resolvable:$true] %s61_s16 }
  0x1b   :  { %s1648_s17 = scalar_lea.vmem %s48_s14, 8192  ;;  %p1653_p11 = scmp.lt.s32.totalorder %s48_s14, %s48_s14 }
  0x1c   :  { %p1649_p10 = scmp.ne.s32.totalorder %s48_s14, %s1648_s17  ;;  %p1654_p12 = scmp.lt.s32.totalorder %s1648_s17, %s1648_s17 }
  0x1e   :  { %p1655_p13 = por %p1654_p12, %p1653_p11 }
  0x20   :  { %p1656_p0 = pnand %p1655_p13, %p1649_p10 }
  0x22   :  { %1659 = shalt.err (!%p1656_p0)
}
  0x23   :  { %s1736_s1 = smov 4   ;;  %s1668_s0 = scalar_lea.vmem %s62_s16, 1024 }
  0x24   :  { %53 = dma.hbm_to_vmem [thread:$0]  %s2071_s2, 8192, %s48_s14, [#allocation8], %s1733_s30, %s1733_s30, %s1736_s1  }
  0x25   :  { %p1669_p1 = scmp.ne.s32.totalorder %s62_s16, %s1668_s0  ;;  %p1673_p2 = scmp.lt.s32.totalorder %s62_s16, %s62_s16 }
  0x26   :  { %p1674_p3 = scmp.lt.s32.totalorder %s1668_s0, %s1668_s0 }
  0x28   :  { %p1675_p4 = por %p1674_p3, %p1673_p2 }
  0x2a   :  { %p1676_p5 = pnand %p1675_p4, %p1669_p1 }
  0x2c   :  { %1679 = shalt.err (!%p1676_p5)
}
  0x2d   :  { %67 = dma.hbm_to_vmem [thread:$0]  %s2073_s4, 1024, %s62_s16, [#allocation11], %s1733_s30, %s1733_s30, %s1736_s1  }
  0x2e   :  { %1720 = dma.done.wait [#allocation5], 2048  }
  0x2f   :  { %1721 = vsyncadd [#allocation5], 4294965248 }
  0x30   :  { %1722 = dma.done.wait [#allocation8], 10240  }
  0x31   :  { %1723 = vsyncadd [#allocation8], 4294957056 }
  0x32   :  { %1724 = dma.done.wait [#allocation11], 1024  }
  0x33   :  { %1725 = vsyncadd [#allocation11], 4294966272  ;;  %v1801_v0 = vld [vmem:[#allocation9 + $0x78] sm:$0xff]   ;;  %v1812_v4 = vld [vmem:[#allocation9 + $0x70] sm:$0xff]   ;;  %vm1738_vm0 = vmmov 0   ;;  %s1739_s23 = smov [#allocation12]  }
  0x34   :  { %v1803_v1 = vld [vmem:[#allocation9 + $0xf8] sm:$0xff]   ;;  %1281 = vmatprep.subr.bf16.mxu0 %v1801_v0  ;;  %v1815_v5 = vld [vmem:[#allocation9 + $0xf0] sm:$0xff]   ;;  %v1824_v8 = vld [vmem:[#allocation9 + $0x68] sm:$0xff]   ;;  %s1177_s24 = sshll.u32 %s1739_s23, 4  ;;  %s1178_s24 = int_to_ptr.vmem [resolvable:$true] %s1177_s24 }
  0x35   :  { %v1806_v2 = vld [vmem:[#allocation9 + $0x38] sm:$0xff]   ;;  %1303 = vmatprep.subr.bf16.mxu1 %v1803_v1  ;;  %v1818_v6 = vld [vmem:[#allocation9 + $0x30] sm:$0xff]   ;;  %v1827_v9 = vld [vmem:[#allocation9 + $0xe8] sm:$0xff]   ;;  %s1680_s25 = scalar_lea.vmem %s1178_s24, 256  ;;  %p1685_p7 = scmp.lt.s32.totalorder %s1178_s24, %s1178_s24 }
  0x36   :  { %v1809_v3 = vld [vmem:[#allocation9 + $0xb8] sm:$0xff]   ;;  %1282 = vmatpush3.bf16.msra.mxu0 %v1806_v2  ;;  %v1821_v7 = vld [vmem:[#allocation9 + $0xb0] sm:$0xff]   ;;  %v1830_v10 = vld [vmem:[#allocation9 + $0x28] sm:$0xff]   ;;  %p1681_p6 = scmp.ne.s32.totalorder %s1178_s24, %s1680_s25  ;;  %p1686_p8 = scmp.lt.s32.totalorder %s1680_s25, %s1680_s25 }
  0x37   :  { %1304 = vmatpush3.bf16.msra.mxu1 %v1809_v3  ;;  %1283 = vmatprep.subr.bf16.mxu0 %v1812_v4  ;;  %v1833_v11 = vld [vmem:[#allocation9 + $0xa8] sm:$0xff]   ;;  %v1836_v12 = vld [vmem:[#allocation9 + $0x60] sm:$0xff]   ;;  %v1848_v16 = vld [vmem:[#allocation9 + $0x58] sm:$0xff]  }
  0x38   :  { %1305 = vmatprep.subr.bf16.mxu1 %v1815_v5  ;;  %v1839_v13 = vld [vmem:[#allocation9 + $0xe0] sm:$0xff]   ;;  %v1851_v17 = vld [vmem:[#allocation9 + $0xd8] sm:$0xff]   ;;  %v1860_v20 = vld [vmem:[#allocation9 + $0x50] sm:$0xff]   ;;  %p1687_p9 = por %p1686_p8, %p1685_p7 }
  0x39   :  { %v1842_v14 = vld [vmem:[#allocation9 + $0x20] sm:$0xff]   ;;  %v1854_v18 = vld [vmem:[#allocation9 + $0x18] sm:$0xff]   ;;  %v1863_v21 = vld [vmem:[#allocation9 + $0xd0] sm:$0xff]  }
  0x3a   :  { %1284 = vmatpush3.bf16.msra.mxu0 %v1818_v6  ;;  %v1845_v15 = vld [vmem:[#allocation9 + $0xa0] sm:$0xff]   ;;  %v1857_v19 = vld [vmem:[#allocation9 + $0x98] sm:$0xff]   ;;  %v1866_v22 = vld [vmem:[#allocation9 + $0x10] sm:$0xff]   ;;  %p1688_p10 = pnand %p1687_p9, %p1681_p6 }
  0x3b   :  { %1306 = vmatpush3.bf16.msra.mxu1 %v1821_v7  ;;  %1285 = vmatprep.subr.bf16.mxu0 %v1824_v8  ;;  %v1869_v23 = vld [vmem:[#allocation9 + $0x90] sm:$0xff]   ;;  %v1872_v24 = vld [vmem:[#allocation9 + $0x48] sm:$0xff]   ;;  %v1884_v28 = vld [vmem:[#allocation9 + $0x40] sm:$0xff]  }
  0x3c   :  { %1307 = vmatprep.subr.bf16.mxu1 %v1827_v9  ;;  %v1875_v25 = vld [vmem:[#allocation9 + $0xc8] sm:$0xff]   ;;  %v1887_v29 = vld [vmem:[#allocation9 + $0xc0] sm:$0xff]   ;;  %v224_v34 = vld [vmem:[#allocation4 + $0x18] sm:$0xff] }
  0x3d   :  { %v1878_v26 = vld [vmem:[#allocation9 + $0x8] sm:$0xff]   ;;  %v1890_v30 = vld [vmem:[#allocation9] sm:$0xff]   ;;  %v232_v36 = vld [vmem:[#allocation4 + $0x58] sm:$0xff] }
  0x3e   :  { %1286 = vmatpush3.bf16.msra.mxu0 %v1830_v10  ;;  %v1881_v27 = vld [vmem:[#allocation9 + $0x88] sm:$0xff]   ;;  %v1893_v31 = vld [vmem:[#allocation9 + $0x80] sm:$0xff]   ;;  %v240_v39 = vpack.c.bf16 %v232_v36, %v224_v34  ;;  %v223_v41 = vld [vmem:[#allocation4 + $0x10] sm:$0xff] }
  0x3f   :  { %1308 = vmatpush3.bf16.msra.mxu1 %v1833_v11  ;;  %1287 = vmatprep.subr.bf16.mxu0 %v1836_v12  ;;  %v222_v32 = vld [vmem:[#allocation4 + $0x8] sm:$0xff]  ;;  %v221_v37 = vld [vmem:[#allocation4] sm:$0xff]  ;;  %v231_v42 = vld [vmem:[#allocation4 + $0x50] sm:$0xff] }
  0x40   :  { %1309 = vmatprep.subr.bf16.mxu1 %v1839_v13  ;;  %v230_v33 = vld [vmem:[#allocation4 + $0x48] sm:$0xff]  ;;  %v229_v38 = vld [vmem:[#allocation4 + $0x40] sm:$0xff]  ;;  %v239_v43 = vpack.c.bf16 %v231_v42, %v223_v41  ;;  %v1897_v44 = vld [vmem:[#allocation9 + $0x178] sm:$0xff]   ;;  %702 = vmatprep.mubr.bf16.mxu1 %v240_v39 }
  0x41   :  { %v238_v35 = vpack.c.bf16 %v230_v33, %v222_v32  ;;  %v237_v40 = vpack.c.bf16 %v229_v38, %v221_v37  ;;  %v1899_v45 = vld [vmem:[#allocation9 + $0x1f8] sm:$0xff]   ;;  %v1908_v48 = vld [vmem:[#allocation9 + $0x170] sm:$0xff]   ;;  %v1920_v52 = vld [vmem:[#allocation9 + $0x168] sm:$0xff]  }
  0x42   :  { %1288 = vmatpush3.bf16.msra.mxu0 %v1842_v14  ;;  %v1902_v46 = vld [vmem:[#allocation9 + $0x138] sm:$0xff]   ;;  %v1911_v49 = vld [vmem:[#allocation9 + $0x1f0] sm:$0xff]   ;;  %v1923_v53 = vld [vmem:[#allocation9 + $0x1e8] sm:$0xff]  }
  0x43   :  { %1310 = vmatpush3.bf16.msra.mxu1 %v1845_v15  ;;  %1289 = vmatprep.subr.bf16.mxu0 %v1848_v16  ;;  %v1905_v47 = vld [vmem:[#allocation9 + $0x1b8] sm:$0xff]   ;;  %v1914_v50 = vld [vmem:[#allocation9 + $0x130] sm:$0xff]   ;;  %v1926_v54 = vld [vmem:[#allocation9 + $0x128] sm:$0xff]  }
  0x44   :  { %1311 = vmatprep.subr.bf16.mxu1 %v1851_v17  ;;  %661 = vmatprep.mubr.bf16.mxu0 %v238_v35  ;;  %v1917_v51 = vld [vmem:[#allocation9 + $0x1b0] sm:$0xff]   ;;  %v1929_v55 = vld [vmem:[#allocation9 + $0x1a8] sm:$0xff]   ;;  %v1932_v56 = vld [vmem:[#allocation9 + $0x160] sm:$0xff]  }
  0x45   :  { %v1935_v57 = vld [vmem:[#allocation9 + $0x1e0] sm:$0xff]   ;;  %v1944_v60 = vld [vmem:[#allocation9 + $0x158] sm:$0xff]   ;;  %v1956_v32 = vld [vmem:[#allocation9 + $0x150] sm:$0xff]  }
  0x46   :  { %1290 = vmatpush3.bf16.msra.mxu0 %v1854_v18  ;;  %v1938_v58 = vld [vmem:[#allocation9 + $0x120] sm:$0xff]   ;;  %2096 = vst [vmem:[#allocation22_spill] sm:$0xff] %v1944_v60  ;;  %v1947_v61 = vld [vmem:[#allocation9 + $0x1d8] sm:$0xff]   ;;  %2100 = vst [vmem:[#allocation26_spill] sm:$0xff] %v1956_v32 }
  0x47   :  { %1312 = vmatpush3.bf16.msra.mxu1 %v1857_v19  ;;  %1291 = vmatprep.subr.bf16.mxu0 %v1860_v20  ;;  %2094 = vst [vmem:[#allocation20_spill] sm:$0xff] %v1938_v58  ;;  %v1941_v59 = vld [vmem:[#allocation9 + $0x1a0] sm:$0xff]   ;;  %2097 = vst [vmem:[#allocation23_spill] sm:$0xff] %v1947_v61  ;;  %v1950_v62 = vld [vmem:[#allocation9 + $0x118] sm:$0xff]  }
  0x48   :  { %1313 = vmatprep.subr.bf16.mxu1 %v1863_v21  ;;  %2095 = vst [vmem:[#allocation21_spill] sm:$0xff] %v1941_v59  ;;  %2098 = vst [vmem:[#allocation24_spill] sm:$0xff] %v1950_v62  ;;  %v1953_v63 = vld [vmem:[#allocation9 + $0x198] sm:$0xff]   ;;  %v1959_v33 = vld [vmem:[#allocation9 + $0x1d0] sm:$0xff]  }
  0x49   :  { %2099 = vst [vmem:[#allocation25_spill] sm:$0xff] %v1953_v63  ;;  %2101 = vst [vmem:[#allocation27_spill] sm:$0xff] %v1959_v33  ;;  %v1962_v34 = vld [vmem:[#allocation9 + $0x110] sm:$0xff]   ;;  %v1968_v36 = vld [vmem:[#allocation9 + $0x148] sm:$0xff]  }
  0x4a   :  { %1292 = vmatpush3.bf16.msra.mxu0 %v1866_v22  ;;  %2102 = vst [vmem:[#allocation28_spill] sm:$0xff] %v1962_v34  ;;  %v1965_v35 = vld [vmem:[#allocation9 + $0x190] sm:$0xff]   ;;  %2104 = vst [vmem:[#allocation30_spill] sm:$0xff] %v1968_v36  ;;  %v1971_v37 = vld [vmem:[#allocation9 + $0x1c8] sm:$0xff]  }
  0x4b   :  { %1314 = vmatpush3.bf16.msra.mxu1 %v1869_v23  ;;  %1293 = vmatprep.subr.bf16.mxu0 %v1872_v24  ;;  %2103 = vst [vmem:[#allocation29_spill] sm:$0xff] %v1965_v35  ;;  %2105 = vst [vmem:[#allocation31_spill] sm:$0xff] %v1971_v37  ;;  %v1974_v38 = vld [vmem:[#allocation9 + $0x108] sm:$0xff]   ;;  %v1983_v41 = vld [vmem:[#allocation9 + $0x1c0] sm:$0xff]  }
  0x4c   :  { %1315 = vmatprep.subr.bf16.mxu1 %v1875_v25  ;;  %2106 = vst [vmem:[#allocation32_spill] sm:$0xff] %v1974_v38  ;;  %v1977_v39 = vld [vmem:[#allocation9 + $0x188] sm:$0xff]   ;;  %2109 = vst [vmem:[#allocation35_spill] sm:$0xff] %v1983_v41  ;;  %v1986_v42 = vld [vmem:[#allocation9 + $0x100] sm:$0xff]  }
  0x4d   :  { %2107 = vst [vmem:[#allocation33_spill] sm:$0xff] %v1977_v39  ;;  %2110 = vst [vmem:[#allocation36_spill] sm:$0xff] %v1986_v42 }
  0x4e   :  { %1294 = vmatpush3.bf16.msra.mxu0 %v1878_v26 }
  0x4f   :  { %1316 = vmatpush3.bf16.msra.mxu1 %v1881_v27  ;;  %1295 = vmatprep.subr.bf16.mxu0 %v1884_v28 }
  0x50   :  { %1317 = vmatprep.subr.bf16.mxu1 %v1887_v29 }
  0x52   :  { %1296 = vmatpush3.bf16.msra.mxu0 %v1890_v30 }
  0x53   :  { %1318 = vmatpush3.bf16.msra.mxu1 %v1893_v31  ;;  %1325 = vmatprep.subr.bf16.mxu0 %v1897_v44 }
  0x54   :  { %1347 = vmatprep.subr.bf16.mxu1 %v1899_v45 }
  0x55   :  { %662 = vmatmul.mubr.bf16.vlgmr.msra.gmra.mxu0 %v237_v40  ;;  %v1980_v40 = vld [vmem:[#allocation9 + $0x140] sm:$0xff]  }
  0x56   :  { %703 = vmatmul.mubr.bf16.vlgmr.msra.gmra.mxu1 %v239_v43  ;;  %1326 = vmatpush3.bf16.msra.mxu0 %v1902_v46  ;;  %2108 = vst [vmem:[#allocation34_spill] sm:$0xff] %v1980_v40  ;;  %v1989_v43 = vld [vmem:[#allocation9 + $0x180] sm:$0xff]  }
  0x57   :  { %1348 = vmatpush3.bf16.msra.mxu1 %v1905_v47  ;;  %1327 = vmatprep.subr.bf16.mxu0 %v1908_v48 }
  0x58   :  { %1349 = vmatprep.subr.bf16.mxu1 %v1911_v49 }
  0x5a   :  { %1328 = vmatpush3.bf16.msra.mxu0 %v1914_v50 }
  0x5b   :  { %1350 = vmatpush3.bf16.msra.mxu1 %v1917_v51  ;;  %1329 = vmatprep.subr.bf16.mxu0 %v1920_v52 }
  0x5c   :  { %1351 = vmatprep.subr.bf16.mxu1 %v1923_v53 }
  0x5e   :  { %1330 = vmatpush3.bf16.msra.mxu0 %v1926_v54 }
  0x5f   :  { %1352 = vmatpush3.bf16.msra.mxu1 %v1929_v55  ;;  %1331 = vmatprep.subr.bf16.mxu0 %v1932_v56 }
  0x60   :  { %1353 = vmatprep.subr.bf16.mxu1 %v1935_v57 }
  0x62   :  { %1332 = vmatpush3.bf16.msra.mxu0 %v1938_v58  ;;  %v810_v58 = vld [vmem:[#allocation7 + $0x58] sm:$0xff] }
  0x63   :  { %1354 = vmatpush3.bf16.msra.mxu1 %v1941_v59  ;;  %1333 = vmatprep.subr.bf16.mxu0 %v1944_v60  ;;  %v802_v59 = vld [vmem:[#allocation7 + $0x18] sm:$0xff] }
  0x64   :  { %1355 = vmatprep.subr.bf16.mxu1 %v1947_v61  ;;  %v808_v61 = vld [vmem:[#allocation7 + $0x48] sm:$0xff] }
  0x66   :  { %1334 = vmatpush3.bf16.msra.mxu0 %v1950_v62  ;;  %v235_v62 = vld [vmem:[#allocation4 + $0x70] sm:$0xff] }
  0x67   :  { %1356 = vmatpush3.bf16.msra.mxu1 %v1953_v63  ;;  %1335 = vmatprep.subr.bf16.mxu0 %v1956_v32  ;;  %v233_v32 = vld [vmem:[#allocation4 + $0x60] sm:$0xff]  ;;  %v227_v63 = vld [vmem:[#allocation4 + $0x30] sm:$0xff] }
  0x68   :  { %1357 = vmatprep.subr.bf16.mxu1 %v1959_v33  ;;  %v225_v33 = vld [vmem:[#allocation4 + $0x20] sm:$0xff] }
  0x6a   :  { %1336 = vmatpush3.bf16.msra.mxu0 %v1962_v34 }
  0x6b   :  { %1358 = vmatpush3.bf16.msra.mxu1 %v1965_v35  ;;  %1337 = vmatprep.subr.bf16.mxu0 %v1968_v36  ;;  %v226_v36 = vld [vmem:[#allocation4 + $0x28] sm:$0xff]  ;;  %v228_v35 = vld [vmem:[#allocation4 + $0x38] sm:$0xff] }
  0x6c   :  { %1359 = vmatprep.subr.bf16.mxu1 %v1971_v37  ;;  %v234_v37 = vld [vmem:[#allocation4 + $0x68] sm:$0xff] }
  0x6d   :  { %v242_v34 = vpack.c.bf16 %v234_v37, %v226_v36  ;;  %v818_v36 = vpack.c.bf16 %v810_v58, %v802_v59 }
  0x6e   :  { %1338 = vmatpush3.bf16.msra.mxu0 %v1974_v38  ;;  %v236_v38 = vld [vmem:[#allocation4 + $0x78] sm:$0xff] }
  0x6f   :  { %1360 = vmatpush3.bf16.msra.mxu1 %v1977_v39  ;;  %1339 = vmatprep.subr.bf16.mxu0 %v1980_v40  ;;  %v244_v39 = vpack.c.bf16 %v236_v38, %v228_v35  ;;  %v241_v40 = vpack.c.bf16 %v233_v32, %v225_v33 }
  0x70   :  { %1361 = vmatprep.subr.bf16.mxu1 %v1983_v41  ;;  %v800_v41 = vld [vmem:[#allocation7 + $0x8] sm:$0xff]  ;;  %743 = vmatprep.mubr.bf16.mxu0 %v242_v34 }
  0x71   :  { %784 = vmatprep.mubr.bf16.mxu1 %v244_v39  ;;  %v816_v60 = vpack.c.bf16 %v808_v61, %v800_v41 }
  0x72   :  { %1340 = vmatpush3.bf16.msra.mxu0 %v1986_v42  ;;  %v243_v42 = vpack.c.bf16 %v235_v62, %v227_v63 }
  0x73   :  { %1362 = vmatpush3.bf16.msra.mxu1 %v1989_v43  ;;  %1369 = vmatprep.subr.bf16.mxu0 %v1801_v0  ;;  %v799_v0 = vld [vmem:[#allocation7] sm:$0xff] }
  0x74   :  { %1391 = vmatprep.subr.bf16.mxu1 %v1803_v1  ;;  %v807_v1 = vld [vmem:[#allocation7 + $0x40] sm:$0xff] }
  0x75   :  { %744 = vmatmul.mubr.bf16.vlgmr.msra.gmra.mxu0 %v241_v40 }
  0x76   :  { %785 = vmatmul.mubr.bf16.vlgmr.msra.gmra.mxu1 %v243_v42  ;;  %1370 = vmatpush3.bf16.msra.mxu0 %v1806_v2  ;;  %v801_v2 = vld [vmem:[#allocation7 + $0x10] sm:$0xff] }
  0x77   :  { %1392 = vmatpush3.bf16.msra.mxu1 %v1809_v3  ;;  %1371 = vmatprep.subr.bf16.mxu0 %v1812_v4  ;;  %v809_v3 = vld [vmem:[#allocation7 + $0x50] sm:$0xff]  ;;  %v815_v4 = vpack.c.bf16 %v807_v1, %v799_v0 }
  0x78   :  { %1393 = vmatprep.subr.bf16.mxu1 %v1815_v5  ;;  %855 = vmatprep.mubr.bf16.mxu0 %v816_v60  ;;  %v804_v5 = vld [vmem:[#allocation7 + $0x28] sm:$0xff] }
  0x79   :  { %896 = vmatprep.mubr.bf16.mxu1 %v818_v36 }
  0x7a   :  { %1372 = vmatpush3.bf16.msra.mxu0 %v1818_v6  ;;  %v812_v6 = vld [vmem:[#allocation7 + $0x68] sm:$0xff] }
  0x7b   :  { %1394 = vmatpush3.bf16.msra.mxu1 %v1821_v7  ;;  %1373 = vmatprep.subr.bf16.mxu0 %v1824_v8  ;;  %v817_v7 = vpack.c.bf16 %v809_v3, %v801_v2  ;;  %v806_v8 = vld [vmem:[#allocation7 + $0x38] sm:$0xff] }
  0x7c   :  { %1395 = vmatprep.subr.bf16.mxu1 %v1827_v9  ;;  %v814_v9 = vld [vmem:[#allocation7 + $0x78] sm:$0xff] }
  0x7e   :  { %1374 = vmatpush3.bf16.msra.mxu0 %v1830_v10  ;;  %v820_v10 = vpack.c.bf16 %v812_v6, %v804_v5 }
  0x7f   :  { %1396 = vmatpush3.bf16.msra.mxu1 %v1833_v11  ;;  %1375 = vmatprep.subr.bf16.mxu0 %v1836_v12  ;;  %v822_v11 = vpack.c.bf16 %v814_v9, %v806_v8  ;;  %v2111_v12 = vld [vmem:[#allocation20_spill] sm:$0xff] }
  0x80   :  { %1397 = vmatprep.subr.bf16.mxu1 %v1839_v13  ;;  %v2112_v13 = vld [vmem:[#allocation21_spill] sm:$0xff] }
  0x82   :  { %1376 = vmatpush3.bf16.msra.mxu0 %v1842_v14  ;;  %v2113_v14 = vld [vmem:[#allocation22_spill] sm:$0xff] }
  0x83   :  { %1398 = vmatpush3.bf16.msra.mxu1 %v1845_v15  ;;  %1377 = vmatprep.subr.bf16.mxu0 %v1848_v16  ;;  %v2114_v15 = vld [vmem:[#allocation23_spill] sm:$0xff]  ;;  %v2115_v16 = vld [vmem:[#allocation24_spill] sm:$0xff] }
  0x84   :  { %1399 = vmatprep.subr.bf16.mxu1 %v1851_v17  ;;  %v2116_v17 = vld [vmem:[#allocation25_spill] sm:$0xff] }
  0x86   :  { %1378 = vmatpush3.bf16.msra.mxu0 %v1854_v18  ;;  %v2117_v18 = vld [vmem:[#allocation26_spill] sm:$0xff] }
  0x87   :  { %1400 = vmatpush3.bf16.msra.mxu1 %v1857_v19  ;;  %1379 = vmatprep.subr.bf16.mxu0 %v1860_v20  ;;  %v2118_v19 = vld [vmem:[#allocation27_spill] sm:$0xff]  ;;  %v2119_v20 = vld [vmem:[#allocation28_spill] sm:$0xff] }
  0x88   :  { %1401 = vmatprep.subr.bf16.mxu1 %v1863_v21  ;;  %v2120_v21 = vld [vmem:[#allocation29_spill] sm:$0xff] }
  0x8a   :  { %1380 = vmatpush3.bf16.msra.mxu0 %v1866_v22  ;;  %v2121_v22 = vld [vmem:[#allocation30_spill] sm:$0xff] }
  0x8b   :  { %1402 = vmatpush3.bf16.msra.mxu1 %v1869_v23  ;;  %1381 = vmatprep.subr.bf16.mxu0 %v1872_v24  ;;  %v2122_v23 = vld [vmem:[#allocation31_spill] sm:$0xff]  ;;  %v2123_v24 = vld [vmem:[#allocation32_spill] sm:$0xff] }
  0x8c   :  { %1403 = vmatprep.subr.bf16.mxu1 %v1875_v25  ;;  %v803_v25 = vld [vmem:[#allocation7 + $0x20] sm:$0xff] }
  0x8e   :  { %1382 = vmatpush3.bf16.msra.mxu0 %v1878_v26  ;;  %v811_v26 = vld [vmem:[#allocation7 + $0x60] sm:$0xff] }
  0x8f   :  { %1404 = vmatpush3.bf16.msra.mxu1 %v1881_v27  ;;  %1383 = vmatprep.subr.bf16.mxu0 %v1884_v28  ;;  %v2124_v27 = vld [vmem:[#allocation33_spill] sm:$0xff]  ;;  %v2125_v28 = vld [vmem:[#allocation34_spill] sm:$0xff] }
  0x90   :  { %1405 = vmatprep.subr.bf16.mxu1 %v1887_v29  ;;  %v805_v29 = vld [vmem:[#allocation7 + $0x30] sm:$0xff] }
  0x92   :  { %1384 = vmatpush3.bf16.msra.mxu0 %v1890_v30  ;;  %v813_v30 = vld [vmem:[#allocation7 + $0x70] sm:$0xff] }
  0x93   :  { %1406 = vmatpush3.bf16.msra.mxu1 %v1893_v31  ;;  %1413 = vmatprep.subr.bf16.mxu0 %v1897_v44  ;;  %v2126_v31 = vld [vmem:[#allocation35_spill] sm:$0xff]  ;;  %v819_v44 = vpack.c.bf16 %v811_v26, %v803_v25 }
  0x94   :  { %1435 = vmatprep.subr.bf16.mxu1 %v1899_v45  ;;  %v2127_v45 = vld [vmem:[#allocation36_spill] sm:$0xff] }
  0x95   :  { %856 = vmatmul.mubr.bf16.vlgmr.msra.gmra.mxu0 %v815_v4 }
  0x96   :  { %897 = vmatmul.mubr.bf16.vlgmr.msra.gmra.mxu1 %v817_v7  ;;  %1414 = vmatpush3.bf16.msra.mxu0 %v1902_v46  ;;  %v821_v46 = vpack.c.bf16 %v813_v30, %v805_v29  ;;  %v1271_v7 = vld [vmem:[%s2072_s3] ss:$0 sm:$0xff] }
  0x97   :  { %1436 = vmatpush3.bf16.msra.mxu1 %v1905_v47  ;;  %1415 = vmatprep.subr.bf16.mxu0 %v1908_v48  ;;  %v1592_v47 = vld [vmem:[#allocation10 + $0x38] sm:$0xff]   ;;  %v1737_v48 = vmov 0.0  }
  0x98   :  { %1437 = vmatprep.subr.bf16.mxu1 %v1911_v49  ;;  %937 = vmatprep.mubr.bf16.mxu0 %v820_v10  ;;  %v1593_v49 = vld [vmem:[#allocation10 + $0x30] sm:$0xff]  }
  0x99   :  { %978 = vmatprep.mubr.bf16.mxu1 %v822_v11 }
  0x9a   :  { %1416 = vmatpush3.bf16.msra.mxu0 %v1914_v50  ;;  %v1594_v50 = vld [vmem:[#allocation10 + $0x28] sm:$0xff]  }
  0x9b   :  { %1438 = vmatpush3.bf16.msra.mxu1 %v1917_v51  ;;  %1417 = vmatprep.subr.bf16.mxu0 %v1920_v52  ;;  %v1595_v51 = vld [vmem:[#allocation10 + $0x20] sm:$0xff]   ;;  %v1596_v52 = vld [vmem:[#allocation10 + $0x18] sm:$0xff]  }
  0x9c   :  { %1439 = vmatprep.subr.bf16.mxu1 %v1923_v53  ;;  %v1597_v53 = vld [vmem:[#allocation10 + $0x10] sm:$0xff]  }
  0x9e   :  { %1418 = vmatpush3.bf16.msra.mxu0 %v1926_v54  ;;  %v1598_v54 = vld [vmem:[#allocation10 + $0x8] sm:$0xff]  }
  0x9f   :  { %1440 = vmatpush3.bf16.msra.mxu1 %v1929_v55  ;;  %1419 = vmatprep.subr.bf16.mxu0 %v1932_v56  ;;  %v1599_v55 = vld [vmem:[#allocation10] sm:$0xff]  }
  0xa0   :  { %1441 = vmatprep.subr.bf16.mxu1 %v1935_v57 }
  0xa2   :  { %1420 = vmatpush3.bf16.msra.mxu0 %v2111_v12 }
  0xa3   :  { %1442 = vmatpush3.bf16.msra.mxu1 %v2112_v13  ;;  %1421 = vmatprep.subr.bf16.mxu0 %v2113_v14 }
  0xa4   :  { %1443 = vmatprep.subr.bf16.mxu1 %v2114_v15 }
  0xa6   :  { %1422 = vmatpush3.bf16.msra.mxu0 %v2115_v16 }
  0xa7   :  { %1444 = vmatpush3.bf16.msra.mxu1 %v2116_v17  ;;  %1423 = vmatprep.subr.bf16.mxu0 %v2117_v18 }
  0xa8   :  { %1445 = vmatprep.subr.bf16.mxu1 %v2118_v19 }
  0xaa   :  { %1424 = vmatpush3.bf16.msra.mxu0 %v2119_v20 }
  0xab   :  { %1446 = vmatpush3.bf16.msra.mxu1 %v2120_v21  ;;  %1425 = vmatprep.subr.bf16.mxu0 %v2121_v22 }
  0xac   :  { %1447 = vmatprep.subr.bf16.mxu1 %v2122_v23 }
  0xae   :  { %1426 = vmatpush3.bf16.msra.mxu0 %v2123_v24 }
  0xaf   :  { %1448 = vmatpush3.bf16.msra.mxu1 %v2124_v27  ;;  %1427 = vmatprep.subr.bf16.mxu0 %v2125_v28 }
  0xb0   :  { %1449 = vmatprep.subr.bf16.mxu1 %v2126_v31 }
  0xb2   :  { %1428 = vmatpush3.bf16.msra.mxu0 %v2127_v45 }
  0xb3   :  { %1450 = vmatpush3.bf16.msra.mxu1 %v1989_v43  ;;  %1475 = vmatprep.subr.bf16.mxu0 %v1737_v48 }
  0xb4   :  { %1495 = vmatprep.subr.bf16.mxu1 %v1737_v48 }
  0xb5   :  { %938 = vmatmul.mubr.bf16.vlgmr.msra.gmra.mxu0 %v819_v44 }
  0xb6   :  { %979 = vmatmul.mubr.bf16.vlgmr.msra.gmra.mxu1 %v821_v46  ;;  %1476 = vmatpush3.bf16.msra.mxu0 %v1592_v47 }
  0xb7   :  { %1477 = vmatprep.subr.bf16.mxu0 %v1737_v48  ;;  %1496 = vmatpush3.bf16.msra.mxu1 %v1592_v47 }
  0xb8   :  { %1497 = vmatprep.subr.bf16.mxu1 %v1737_v48  ;;  %1491 = vmatprep.mubr.msk.bf16.mxu0 %vm1738_vm0, %v1737_v48 }
  0xb9   :  { %1511 = vmatprep.mubr.msk.bf16.mxu1 %vm1738_vm0, %v1737_v48 }
  0xba   :  { %1478 = vmatpush3.bf16.msra.mxu0 %v1593_v49 }
  0xbb   :  { %1479 = vmatprep.subr.bf16.mxu0 %v1737_v48  ;;  %1498 = vmatpush3.bf16.msra.mxu1 %v1593_v49 }
  0xbc   :  { %1499 = vmatprep.subr.bf16.mxu1 %v1737_v48 }
  0xbe   :  { %1480 = vmatpush3.bf16.msra.mxu0 %v1594_v50 }
  0xbf   :  { %1481 = vmatprep.subr.bf16.mxu0 %v1737_v48  ;;  %1500 = vmatpush3.bf16.msra.mxu1 %v1594_v50 }
  0xc0   :  { %1501 = vmatprep.subr.bf16.mxu1 %v1737_v48 }
  0xc2   :  { %1482 = vmatpush3.bf16.msra.mxu0 %v1595_v51 }
  0xc3   :  { %1483 = vmatprep.subr.bf16.mxu0 %v1737_v48  ;;  %1502 = vmatpush3.bf16.msra.mxu1 %v1595_v51 }
  0xc4   :  { %1503 = vmatprep.subr.bf16.mxu1 %v1737_v48 }
  0xc6   :  { %1484 = vmatpush3.bf16.msra.mxu0 %v1596_v52 }
  0xc7   :  { %1485 = vmatprep.subr.bf16.mxu0 %v1737_v48  ;;  %1504 = vmatpush3.bf16.msra.mxu1 %v1596_v52 }
  0xc8   :  { %1505 = vmatprep.subr.bf16.mxu1 %v1737_v48 }
  0xca   :  { %1486 = vmatpush3.bf16.msra.mxu0 %v1597_v53 }
  0xcb   :  { %1487 = vmatprep.subr.bf16.mxu0 %v1737_v48  ;;  %1506 = vmatpush3.bf16.msra.mxu1 %v1597_v53 }
  0xcc   :  { %1507 = vmatprep.subr.bf16.mxu1 %v1737_v48 }
  0xce   :  { %1488 = vmatpush3.bf16.msra.mxu0 %v1598_v54 }
  0xcf   :  { %1489 = vmatprep.subr.bf16.mxu0 %v1737_v48  ;;  %1508 = vmatpush3.bf16.msra.mxu1 %v1598_v54 }
  0xd0   :  { %1509 = vmatprep.subr.bf16.mxu1 %v1737_v48 }
  0xd2   :  { %1490 = vmatpush3.bf16.msra.mxu0 %v1599_v55 }
  0xd3   :  { %1510 = vmatpush3.bf16.msra.mxu1 %v1599_v55 }
 0x115   :  { %v1297_v56 = vpop.f32.mrf.mxu0 }
 0x116   :  { %v1319_v57 = vpop.f32.mrf.mxu1 }
 0x117   :  { %v1298_v58 = vpop.f32.mrf.mxu0 }
 0x118   :  { %v1320_v59 = vpop.f32.mrf.mxu1  ;;  %v1299_v63 = vadd.f32 %v1298_v58, %v1297_v56 }
 0x119   :  { %v1300_v60 = vpop.f32.mrf.mxu0  ;;  %v1321_v32 = vadd.f32 %v1320_v59, %v1319_v57 }
 0x11a   :  { %v1322_v61 = vpop.f32.mrf.mxu1 }
 0x11b   :  { %v1301_v62 = vpop.f32.mrf.mxu0  ;;  %v705_v38 = vadd.f32 %v1321_v32, %v1299_v63  ;;  %v1272_v63 = vld [vmem:[%s2074_s5] ss:$0 sm:$0xff] }
 0x11c   :  { %v1323_v33 = vpop.f32.mrf.mxu1  ;;  %v1302_v39 = vadd.f32 %v1301_v62, %v1300_v60 }
 0x11d   :  { %v1324_v40 = vadd.f32 %v1323_v33, %v1322_v61 }
 0x11f   :  { %v708_v3 = vadd.f32 %v1324_v40, %v1302_v39 }
 0x135   :  { %v1341_v34 = vpop.f32.mrf.mxu0 }
 0x136   :  { %v1363_v35 = vpop.f32.mrf.mxu1 }
 0x137   :  { %v1342_v37 = vpop.f32.mrf.mxu0 }
 0x138   :  { %v1343_v41 = vadd.f32 %v1342_v37, %v1341_v34  ;;  %v1364_v42 = vpop.f32.mrf.mxu1 }
 0x139   :  { %v1365_v43 = vadd.f32 %v1364_v42, %v1363_v35  ;;  %v1344_v36 = vpop.f32.mrf.mxu0 }
 0x13a   :  { %v746_v0 = vadd.f32 %v1343_v41, %v705_v38  ;;  %v1366_v1 = vpop.f32.mrf.mxu1 }
 0x13b   :  { %v1345_v2 = vpop.f32.mrf.mxu0 }
 0x13c   :  { %v787_v4 = vadd.f32 %v1365_v43, %v746_v0  ;;  %v1346_v5 = vadd.f32 %v1345_v2, %v1344_v36  ;;  %v1367_v6 = vpop.f32.mrf.mxu1 }
 0x13d   :  { %v1368_v9 = vadd.f32 %v1367_v6, %v1366_v1 }
 0x13e   :  { %v749_v8 = vadd.f32 %v1346_v5, %v708_v3  ;;  %v1020_v10 = vadd.f32 %v1271_v7, %v787_v4 }
 0x140   :  { %v790_v11 = vadd.f32 %v1368_v9, %v749_v8  ;;  %v1022_v13 = vmax.f32 %v1020_v10, 0.0 }
 0x142   :  { %v1021_v12 = vadd.f32 %v1271_v7, %v790_v11 }
 0x144   :  { %v1023_v14 = vmax.f32 %v1021_v12, 0.0 }
 0x146   :  { %v1024_v15 = vpack.c.bf16 %v1023_v14, %v1022_v13 }
 0x148   :  { %1492 = vmatmul.mubr.bf16.vlgmr.msra.gmra.mxu0 %v1024_v15 }
 0x155   :  { %v1385_v16 = vpop.f32.mrf.mxu0 }
 0x156   :  { %v1407_v17 = vpop.f32.mrf.mxu1 }
 0x157   :  { %v1386_v18 = vpop.f32.mrf.mxu0 }
 0x158   :  { %v1408_v19 = vpop.f32.mrf.mxu1  ;;  %v1387_v23 = vadd.f32 %v1386_v18, %v1385_v16 }
 0x159   :  { %v1388_v20 = vpop.f32.mrf.mxu0  ;;  %v1409_v24 = vadd.f32 %v1408_v19, %v1407_v17 }
 0x15a   :  { %v1410_v21 = vpop.f32.mrf.mxu1 }
 0x15b   :  { %v1389_v22 = vpop.f32.mrf.mxu0  ;;  %v899_v29 = vadd.f32 %v1409_v24, %v1387_v23 }
 0x15c   :  { %v1411_v25 = vpop.f32.mrf.mxu1  ;;  %v1390_v30 = vadd.f32 %v1389_v22, %v1388_v20 }
 0x15d   :  { %v1412_v31 = vadd.f32 %v1411_v25, %v1410_v21 }
 0x15f   :  { %v902_v51 = vadd.f32 %v1412_v31, %v1390_v30 }
 0x175   :  { %v1429_v26 = vpop.f32.mrf.mxu0 }
 0x176   :  { %v1451_v27 = vpop.f32.mrf.mxu1 }
 0x177   :  { %v1430_v28 = vpop.f32.mrf.mxu0 }
 0x178   :  { %v1431_v44 = vadd.f32 %v1430_v28, %v1429_v26  ;;  %v1452_v45 = vpop.f32.mrf.mxu1 }
 0x179   :  { %v1432_v46 = vpop.f32.mrf.mxu0  ;;  %v1453_v48 = vadd.f32 %v1452_v45, %v1451_v27 }
 0x17a   :  { %v940_v47 = vadd.f32 %v1431_v44, %v899_v29  ;;  %v1454_v49 = vpop.f32.mrf.mxu1 }
 0x17b   :  { %v1433_v50 = vpop.f32.mrf.mxu0 }
 0x17c   :  { %v981_v52 = vadd.f32 %v1453_v48, %v940_v47  ;;  %v1434_v53 = vadd.f32 %v1433_v50, %v1432_v46  ;;  %v1455_v54 = vpop.f32.mrf.mxu1 }
 0x17d   :  { %v1456_v56 = vadd.f32 %v1455_v54, %v1454_v49 }
 0x17e   :  { %v943_v55 = vadd.f32 %v1434_v53, %v902_v51  ;;  %v1027_v57 = vadd.f32 %v1271_v7, %v981_v52 }
 0x180   :  { %v984_v58 = vadd.f32 %v1456_v56, %v943_v55  ;;  %v1029_v60 = vmax.f32 %v1027_v57, 0.0 }
 0x182   :  { %v1028_v59 = vadd.f32 %v1271_v7, %v984_v58 }
 0x184   :  { %v1030_v61 = vmax.f32 %v1028_v59, 0.0 }
 0x186   :  { %v1031_v62 = vpack.c.bf16 %v1030_v61, %v1029_v60 }
 0x188   :  { %1512 = vmatmul.mubr.bf16.vlgmr.msra.gmra.mxu1 %v1031_v62 }
 0x208   :  { %v1120_v32 = vpop.f32.mrf.mxu0 }
 0x209   :  { %v1121_v33 = vadd.f32 %v1272_v63, %v1120_v32 }
 0x20a   :  { %v1493_v34 = vpop.f32.mrf.mxu0 }
 0x20b   :  { %1127 = vst [vmem:[#allocation12] sm:$0xff] %v1121_v33 }
 0x20c   :  { %v1123_v35 = vpop.f32.mrf.mxu0 }
 0x20d   :  { %v1124_v37 = vadd.f32 %v1272_v63, %v1123_v35 }
 0x20e   :  { %v1494_v38 = vpop.f32.mrf.mxu0 }
 0x20f   :  { %1128 = vst [vmem:[#allocation12 + $0x8] sm:$0xff] %v1124_v37 }
 0x210   :  { %1691 = shalt.err (!%p1688_p10)
}
 0x211   :  { %s1740_s26 = smov 128   ;;  %s1741_s5 = smov 8  }
 0x212   :  { %1183 = dma.vmem_to_hbm [thread:$0]  %s1178_s24, 256, %s2075_s6, [#allocation6], %s1740_s26, %s1740_s26, %s1741_s5  }
 0x213   :  { %s1742_s29 = smov [#allocation13]  }
 0x214   :  { %s1189_s30 = sshll.u32 %s1742_s29, 4  ;;  %s1190_s30 = int_to_ptr.vmem [resolvable:$true] %s1189_s30 }
 0x215   :  { %s1700_s8 = scalar_lea.vmem %s1190_s30, 256  ;;  %p1705_p12 = scmp.lt.s32.totalorder %s1190_s30, %s1190_s30 }
 0x216   :  { %p1701_p11 = scmp.ne.s32.totalorder %s1190_s30, %s1700_s8  ;;  %p1706_p13 = scmp.lt.s32.totalorder %s1700_s8, %s1700_s8 }
 0x218   :  { %p1707_p0 = por %p1706_p13, %p1705_p12 }
 0x21a   :  { %p1708_p1 = pnand %p1707_p0, %p1701_p11 }
 0x248   :  { %v1163_v39 = vpop.f32.mrf.mxu1 }
 0x249   :  { %v1164_v40 = vadd.f32 %v1272_v63, %v1163_v39 }
 0x24a   :  { %v1513_v41 = vpop.f32.mrf.mxu1 }
 0x24b   :  { %1170 = vst [vmem:[#allocation13] sm:$0xff] %v1164_v40 }
 0x24c   :  { %v1166_v42 = vpop.f32.mrf.mxu1 }
 0x24d   :  { %v1167_v43 = vadd.f32 %v1272_v63, %v1166_v42 }
 0x24e   :  { %v1514_v36 = vpop.f32.mrf.mxu1 }
 0x24f   :  { %1171 = vst [vmem:[#allocation13 + $0x8] sm:$0xff] %v1167_v43 }
 0x250   :  { %1711 = shalt.err (!%p1708_p1)
}
 0x251   :  { %1195 = dma.vmem_to_hbm [thread:$0]  %s1190_s30, 256, %s2076_s7, [#allocation14], %s1740_s26, %s1740_s26, %s1741_s5  }
 0x252   :  { %1726 = dma.done.wait [#allocation6], 256  }
 0x253   :  { %1727 = vsyncadd [#allocation6], 4294967040 }
 0x254   :  { %1728 = dma.done.wait [#allocation14], 256  }
 0x255   :  { %1729 = vsyncadd [#allocation14], 4294967040 }
 0x256   :  { %1202 = vsyncpa [#allocation5], 1 }
 0x257   :  { %1203 = vsyncpa [#allocation8], 1 }
 0x258   :  { %1204 = vsyncpa [#allocation11], 1 }
 0x259   :  { %1205 = vsyncpa [#allocation6], 1 }
 0x25a   :  { %1206 = vsyncpa [#allocation14], 1 }

</bundles_post_ra>
